<compile_context>
chip_gen: v7x
topology: tpu7x:2x2x1
jax: 0.10.0
libtpu: 0.0.40
codegen_flags: <defaults>
</compile_context>

<pallas_src>
import jax
import jax.numpy as jnp
from jax.experimental import pallas as pl
from jax.experimental.pallas import tpu as pltpu


def _eltwise_kernel(w_ref, x_ref, o_ref):
    # w_ref: (1, Np) resident in VMEM across the whole grid; x_ref/o_ref: (block_rows, Np)
    o_ref[...] = x_ref[...] * w_ref[...]


def trainable_eltwise_forward(x, weights, *, block_rows=256):
    """x: (R, N) float32, weights: (1, N) float32  ->  (R, N) float32  (x * weights)."""
    R, N = x.shape
    assert weights.shape == (1, N)

    # Pad lanes to a multiple of 128 (lane-dense, unmasked vld/vst) and rows to a multiple of
    # the row tile.  Padding is zeros, which is exact for an elementwise product.
    Np = ((N + 127) // 128) * 128
    tm = min(block_rows, ((R + 7) // 8) * 8)          # row tile, multiple of 8
    Rp = ((R + tm - 1) // tm) * tm

    xp = jnp.pad(x, ((0, Rp - R), (0, Np - N)))
    wp = jnp.pad(weights, ((0, 0), (0, Np - N)))

    out = pl.pallas_call(
        _eltwise_kernel,
        grid=(Rp // tm,),
        in_specs=[
            pl.BlockSpec((1, Np), lambda i: (0, 0)),     # weights: same block every step -> VMEM resident
            pl.BlockSpec((tm, Np), lambda i: (i, 0)),    # x row tiles streamed per grid step
        ],
        out_specs=pl.BlockSpec((tm, Np), lambda i: (i, 0)),
        out_shape=jax.ShapeDtypeStruct((Rp, Np), x.dtype),
        input_output_aliases={1: 0},                     # write result in place over the padded x buffer
        compiler_params=pltpu.CompilerParams(
            dimension_semantics=("parallel",),           # rows are independent -> megacore-shardable on v7x
        ),
    )(wp, xp)

    return out[:R, :N]


if __name__ == "__main__":
    # Small, module-consistent shapes: x is (rows, n) with n = 100 (odd on purpose to
    # exercise the 128-lane padding path), weights is the nn.Parameter of shape (1, n).
    R, N = 512, 100
    k_x, k_w = jax.random.split(jax.random.PRNGKey(0))
    x = jax.random.normal(k_x, (R, N), jnp.float32)
    weights = jax.random.normal(k_w, (1, N), jnp.float32)   # torch.randn((1, n))

    fwd = jax.jit(trainable_eltwise_forward)
    out = fwd(x, weights)
    jax.block_until_ready(out)

    # Correctness check against the plain-JAX reference of the PyTorch forward.
    ref = x * weights
    assert out.shape == (R, N) and out.dtype == jnp.float32
    assert bool(jnp.all(jnp.isfinite(out)))
    assert bool(jnp.allclose(out, ref, rtol=1e-6, atol=1e-6))

    print("KERNEL_OK")
</pallas_src>

<mosaic_0001>
module attributes {stable_mosaic.version = 11 : i64} {
  func.func @_eltwise_kernel(%arg0: i32, %arg1: memref<1x128xf32, #tpu.memory_space<vmem>>, %arg2: memref<256x128xf32, #tpu.memory_space<vmem>>, %arg3: memref<256x128xf32, #tpu.memory_space<vmem>>) attributes {dimension_semantics = [#tpu.dimension_semantics<parallel>], iteration_bounds = array<i64: 2>, scalar_prefetch = 0 : i64, scratch_operands = 0 : i64, tpu.core_type = #tpu.core_type<tc>, window_params = [{pipeline_mode = #tpu.pipeline_mode<synchronous>, transform_indices = @transform_0, window_bounds = array<i64: 1, 128>}, {transform_indices = @transform_1, window_bounds = array<i64: 256, 128>}, {transform_indices = @transform_2, window_bounds = array<i64: 256, 128>}]} {
    %c0 = arith.constant 0 : index
    %c0_0 = arith.constant 0 : index
    %0 = vector.load %arg2[%c0, %c0_0] : memref<256x128xf32, #tpu.memory_space<vmem>>, vector<256x128xf32>
    %c0_1 = arith.constant 0 : index
    %c0_2 = arith.constant 0 : index
    %1 = vector.load %arg1[%c0_1, %c0_2] : memref<1x128xf32, #tpu.memory_space<vmem>>, vector<1x128xf32>
    %2 = vector.broadcast %1 : vector<1x128xf32> to vector<256x128xf32>
    %3 = arith.mulf %0, %2 : vector<256x128xf32>
    %c0_3 = arith.constant 0 : index
    %c0_4 = arith.constant 0 : index
    %4 = vector.load %arg3[%c0_3, %c0_4] : memref<256x128xf32, #tpu.memory_space<vmem>>, vector<256x128xf32>
    tpu.vector_store %arg3[%c0_3, %c0_4], %3 {strides = array<i32>} : memref<256x128xf32, #tpu.memory_space<vmem>>, vector<256x128xf32>,
    return
  }
  func.func @transform_0(%arg0: i32) -> (i32, i32) {
    %c0_i32 = arith.constant 0 : i32
    %c0_i32_0 = arith.constant 0 : i32
    %c0_i32_1 = arith.constant 0 : i32
    return %c0_i32, %c0_i32_0 : i32, i32
  }
  func.func @transform_1(%arg0: i32) -> (i32, i32) {
    %c0_i32 = arith.constant 0 : i32
    %c0_i32_0 = arith.constant 0 : i32
    return %arg0, %c0_i32 : i32, i32
  }
  func.func @transform_2(%arg0: i32) -> (i32, i32) {
    %c0_i32 = arith.constant 0 : i32
    %c0_i32_0 = arith.constant 0 : i32
    return %arg0, %c0_i32 : i32, i32
  }
}

</mosaic_0001>

<bundles_post_ra>
// kernel: trainable_eltwise_forward.1
= control target key start
LH: loop header
LB: loop body
LE: loop exit
PB: predicated region body
PF: predicated region fallthrough
CT: control target
= control target key end

     0   :  { %s349_s9 = smov 0   ;;  %s478_s0 = inlined_call_operand.vmem [shape: f32[1,128], index: 0, kind: input, shape index: {}]   ;;  %s479_s1 = inlined_call_operand.vmem [shape: f32[512,128], index: 1, kind: input, shape index: {}, may-alias: {1,2}]   ;;  %s480_s2 = inlined_call_operand.vmem [shape: f32[512,128], index: 2, kind: output, shape index: {}, may-alias: {1,2}]  }
   0x1 LB: > { %s306_s10 = sadd.s32 4294967295, %s332_s9   ;;  %p310_p0 = scmp.ge.s32.totalorder %s332_s9, 1  ;;  %s332_s9 = sphi %s349_s9, %s12_s9  }
   0x2   : > { %p113_p1 = scmp.lt.s32.totalorder %s332_s9, 3 }
   0x4   : > { %p114_p2 = pnand %p310_p0, %p113_p1 }
   0x5   : > { %s311_s11 = sshll.u32 (!%p114_p2), %s306_s10, 5  ;;  %v370_v0 = vld [vmem:[%s478_s0] ss:$0 sm:$0xff] (!%p114_p2) }
   0x6   : > { %117 = sbr.rel (%p114_p2) target bundleno = 43 (0x2b), region = 28  ;;  %p136_p3 = scmp.lt.s32.totalorder (!%p114_p2), %s311_s11, 63 }
   0xd   : > { %s482_s11 = smov (!%p136_p3, %s311_s11), 63 }
   0xe   : > { %s312_s12 = sshll.u32 %s482_s11, 3 }
   0xf   : > { %s365_s15 = scalar_lea.vmem %s479_s1, %s312_s12  ;;  %s422_s20 = scalar_lea.vmem %s480_s2, %s312_s12 }
  0x10   : > { %v147_v1 = vld [vmem:[%s365_s15] sm:$0xff]  ;;  %v148_v2 = vld [vmem:[%s365_s15 + $0x8] sm:$0xff]  ;;  %v149_v3 = vld [vmem:[%s365_s15 + $0x10] sm:$0xff] }
  0x11   : > { %v150_v4 = vld [vmem:[%s365_s15 + $0x18] sm:$0xff]  ;;  %v151_v5 = vld [vmem:[%s365_s15 + $0x20] sm:$0xff]  ;;  %v152_v6 = vld [vmem:[%s365_s15 + $0x28] sm:$0xff]  ;;  %v186_v10 = vmul.f32 %v370_v0, %v147_v1  ;;  %v187_v14 = vmul.f32 %v370_v0, %v148_v2  ;;  %v188_v15 = vmul.f32 %v370_v0, %v149_v3 }
  0x12   : > { %v153_v7 = vld [vmem:[%s365_s15 + $0x30] sm:$0xff]  ;;  %v154_v8 = vld [vmem:[%s365_s15 + $0x38] sm:$0xff]  ;;  %v155_v9 = vld [vmem:[%s365_s15 + $0x40] sm:$0xff]  ;;  %v189_v16 = vmul.f32 %v370_v0, %v150_v4  ;;  %v190_v17 = vmul.f32 %v370_v0, %v151_v5  ;;  %v191_v21 = vmul.f32 %v370_v0, %v152_v6 }
  0x13   : > { %v156_v11 = vld [vmem:[%s365_s15 + $0x48] sm:$0xff]  ;;  %v157_v12 = vld [vmem:[%s365_s15 + $0x50] sm:$0xff]  ;;  %v158_v13 = vld [vmem:[%s365_s15 + $0x58] sm:$0xff]  ;;  %v192_v22 = vmul.f32 %v370_v0, %v153_v7  ;;  %v193_v23 = vmul.f32 %v370_v0, %v154_v8  ;;  %v194_v24 = vmul.f32 %v370_v0, %v155_v9 }
  0x14   : > { %v159_v18 = vld [vmem:[%s365_s15 + $0x60] sm:$0xff]  ;;  %v160_v19 = vld [vmem:[%s365_s15 + $0x68] sm:$0xff]  ;;  %v161_v20 = vld [vmem:[%s365_s15 + $0x70] sm:$0xff]  ;;  %v195_v28 = vmul.f32 %v370_v0, %v156_v11  ;;  %v196_v29 = vmul.f32 %v370_v0, %v157_v12  ;;  %v197_v30 = vmul.f32 %v370_v0, %v158_v13 }
  0x15   : > { %v162_v25 = vld [vmem:[%s365_s15 + $0x78] sm:$0xff]  ;;  %v163_v26 = vld [vmem:[%s365_s15 + $0x80] sm:$0xff]  ;;  %v164_v27 = vld [vmem:[%s365_s15 + $0x88] sm:$0xff]  ;;  %v198_v31 = vmul.f32 %v370_v0, %v159_v18  ;;  %v199_v35 = vmul.f32 %v370_v0, %v160_v19  ;;  %v200_v36 = vmul.f32 %v370_v0, %v161_v20 }
  0x16   : > { %v165_v32 = vld [vmem:[%s365_s15 + $0x90] sm:$0xff]  ;;  %v166_v33 = vld [vmem:[%s365_s15 + $0x98] sm:$0xff]  ;;  %v167_v34 = vld [vmem:[%s365_s15 + $0xa0] sm:$0xff]  ;;  %v201_v37 = vmul.f32 %v370_v0, %v162_v25  ;;  %v202_v38 = vmul.f32 %v370_v0, %v163_v26  ;;  %v203_v42 = vmul.f32 %v370_v0, %v164_v27 }
  0x17   : > { %v168_v39 = vld [vmem:[%s365_s15 + $0xa8] sm:$0xff]  ;;  %v169_v40 = vld [vmem:[%s365_s15 + $0xb0] sm:$0xff]  ;;  %v170_v41 = vld [vmem:[%s365_s15 + $0xb8] sm:$0xff]  ;;  %v204_v43 = vmul.f32 %v370_v0, %v165_v32  ;;  %v205_v44 = vmul.f32 %v370_v0, %v166_v33  ;;  %v206_v45 = vmul.f32 %v370_v0, %v167_v34 }
  0x18   : > { %v171_v46 = vld [vmem:[%s365_s15 + $0xc0] sm:$0xff]  ;;  %v172_v47 = vld [vmem:[%s365_s15 + $0xc8] sm:$0xff]  ;;  %v173_v48 = vld [vmem:[%s365_s15 + $0xd0] sm:$0xff]  ;;  %v207_v49 = vmul.f32 %v370_v0, %v168_v39  ;;  %v208_v50 = vmul.f32 %v370_v0, %v169_v40  ;;  %v209_v51 = vmul.f32 %v370_v0, %v170_v41 }
  0x19   : > { %v174_v52 = vld [vmem:[%s365_s15 + $0xd8] sm:$0xff]  ;;  %v175_v53 = vld [vmem:[%s365_s15 + $0xe0] sm:$0xff]  ;;  %v176_v54 = vld [vmem:[%s365_s15 + $0xe8] sm:$0xff]  ;;  %v210_v55 = vmul.f32 %v370_v0, %v171_v46  ;;  %v211_v56 = vmul.f32 %v370_v0, %v172_v47  ;;  %v212_v57 = vmul.f32 %v370_v0, %v173_v48 }
  0x1a   : > { %v177_v58 = vld [vmem:[%s365_s15 + $0xf0] sm:$0xff]  ;;  %v178_v59 = vld [vmem:[%s365_s15 + $0xf8] sm:$0xff]  ;;  %v213_v60 = vmul.f32 %v370_v0, %v174_v52  ;;  %v214_v61 = vmul.f32 %v370_v0, %v175_v53  ;;  %v215_v62 = vmul.f32 %v370_v0, %v176_v54 }
  0x1b   : > { %218 = vst [vmem:[%s422_s20] sm:$0xff] %v186_v10  ;;  %219 = vst [vmem:[%s422_s20 + $0x8] sm:$0xff] %v187_v14  ;;  %v216_v63 = vmul.f32 %v370_v0, %v177_v58  ;;  %v217_v1 = vmul.f32 %v370_v0, %v178_v59 }
  0x1c   : > { %220 = vst [vmem:[%s422_s20 + $0x10] sm:$0xff] %v188_v15  ;;  %221 = vst [vmem:[%s422_s20 + $0x18] sm:$0xff] %v189_v16 }
  0x1d   : > { %222 = vst [vmem:[%s422_s20 + $0x20] sm:$0xff] %v190_v17  ;;  %223 = vst [vmem:[%s422_s20 + $0x28] sm:$0xff] %v191_v21 }
  0x1e   : > { %224 = vst [vmem:[%s422_s20 + $0x30] sm:$0xff] %v192_v22  ;;  %225 = vst [vmem:[%s422_s20 + $0x38] sm:$0xff] %v193_v23 }
  0x1f   : > { %226 = vst [vmem:[%s422_s20 + $0x40] sm:$0xff] %v194_v24  ;;  %227 = vst [vmem:[%s422_s20 + $0x48] sm:$0xff] %v195_v28 }
  0x20   : > { %228 = vst [vmem:[%s422_s20 + $0x50] sm:$0xff] %v196_v29  ;;  %229 = vst [vmem:[%s422_s20 + $0x58] sm:$0xff] %v197_v30 }
  0x21   : > { %230 = vst [vmem:[%s422_s20 + $0x60] sm:$0xff] %v198_v31  ;;  %231 = vst [vmem:[%s422_s20 + $0x68] sm:$0xff] %v199_v35 }
  0x22   : > { %232 = vst [vmem:[%s422_s20 + $0x70] sm:$0xff] %v200_v36  ;;  %233 = vst [vmem:[%s422_s20 + $0x78] sm:$0xff] %v201_v37 }
  0x23   : > { %234 = vst [vmem:[%s422_s20 + $0x80] sm:$0xff] %v202_v38  ;;  %235 = vst [vmem:[%s422_s20 + $0x88] sm:$0xff] %v203_v42 }
  0x24   : > { %236 = vst [vmem:[%s422_s20 + $0x90] sm:$0xff] %v204_v43  ;;  %237 = vst [vmem:[%s422_s20 + $0x98] sm:$0xff] %v205_v44 }
  0x25   : > { %238 = vst [vmem:[%s422_s20 + $0xa0] sm:$0xff] %v206_v45  ;;  %239 = vst [vmem:[%s422_s20 + $0xa8] sm:$0xff] %v207_v49 }
  0x26   : > { %240 = vst [vmem:[%s422_s20 + $0xb0] sm:$0xff] %v208_v50  ;;  %241 = vst [vmem:[%s422_s20 + $0xb8] sm:$0xff] %v209_v51 }
  0x27   : > { %242 = vst [vmem:[%s422_s20 + $0xc0] sm:$0xff] %v210_v55  ;;  %243 = vst [vmem:[%s422_s20 + $0xc8] sm:$0xff] %v211_v56 }
  0x28   : > { %244 = vst [vmem:[%s422_s20 + $0xd0] sm:$0xff] %v212_v57  ;;  %245 = vst [vmem:[%s422_s20 + $0xd8] sm:$0xff] %v213_v60 }
  0x29   : > { %246 = vst [vmem:[%s422_s20 + $0xe0] sm:$0xff] %v214_v61  ;;  %247 = vst [vmem:[%s422_s20 + $0xe8] sm:$0xff] %v215_v62 }
  0x2a   : > { %248 = vst [vmem:[%s422_s20 + $0xf0] sm:$0xff] %v216_v63  ;;  %249 = vst [vmem:[%s422_s20 + $0xf8] sm:$0xff] %v217_v1 }
  0x2b PF: > { %s12_s9 = sadd.s32 1, %s332_s9  }
  0x2c   : > { %p9_p4 = scmp.ge.s32.totalorder %s12_s9, 4  }
  0x2e   :  { %11 = sbr.rel (!%p9_p4) target bundleno = 1 (0x1), region = 58 }

</bundles_post_ra>
